<compile_context>
chip_gen: v7x
topology: tpu7x:2x2x1
jax: 0.10.0
libtpu: 0.0.40
codegen_flags: <defaults>
</compile_context>

<pallas_src>
import jax
import jax.numpy as jnp
from jax.experimental import pallas as pl
from jax.experimental.pallas import tpu as pltpu


# --------------------------------------------------------------------------
# Fused SCSE kernel.  Per grid step (one block of TB batch images):
#   x     : (TB, C, HW)
#   w1    : (C, Cr)   == fc1.weight.T        b1 : (1, Cr)
#   w2    : (C, Cr)   == fc2.weight          b2 : (C, 1)
#   wspa  : (C, 1)    == 1x1 conv weight (no bias)
# --------------------------------------------------------------------------
def _scse_kernel(x_ref, w1_ref, b1_ref, w2_ref, b2_ref, wspa_ref, o_ref):
    x = x_ref[...]                                               # (TB, C, HW) f32
    inv_hw = 1.0 / x.shape[-1]

    # ---- channel squeeze: global average pool over HW (lane reduce) -------
    pooled = jnp.sum(x, axis=-1, keepdims=True) * inv_hw         # (TB, C, 1)

    # ---- channel excitation (tiny MLP; VPU broadcast + XLU reduce, no MXU)
    # h[b, 0, j] = relu( sum_c pooled[b, c, 0] * w1[c, j] + b1[0, j] )
    h = jnp.maximum(
        jnp.sum(pooled * w1_ref[...][None], axis=1, keepdims=True)
        + b1_ref[...],
        0.0)                                                     # (TB, 1, Cr)
    # chn[b, c, 0] = sigmoid( sum_j h[b, 0, j] * w2[c, j] + b2[c, 0] )
    chn = jax.nn.sigmoid(
        jnp.sum(h * w2_ref[...][None], axis=2, keepdims=True)
        + b2_ref[...])                                           # (TB, C, 1)

    # ---- spatial excitation: 1x1 conv as broadcast-mul + sublane reduce ---
    spa = jax.nn.sigmoid(
        jnp.sum(x * wspa_ref[...][None], axis=1, keepdims=True))  # (TB, 1, HW)

    # ---- fused epilogue: x*chn + x*spa == x * (chn + spa) -----------------
    o_ref[...] = x * (chn + spa)


def _pick_batch_tile(B, C, HW, itemsize=4, budget_bytes=2 * 1024 * 1024):
    """Largest divisor of B whose (TB, C, HW) block stays within the budget."""
    per_image = C * HW * itemsize
    tb = max(1, min(B, budget_bytes // max(per_image, 1)))
    while B % tb:
        tb -= 1
    return tb


def scse_block(x_nchw, w1, b1, w2, b2, wspa):
    """x_nchw: (B, C, H, W) f32. Returns (B, C, H, W) f32."""
    B, C, H, W = x_nchw.shape
    HW = H * W
    Cr = w1.shape[1]
    x = x_nchw.reshape(B, C, HW)          # free contiguous reshape, lane-dense HW

    TB = _pick_batch_tile(B, C, HW)       # images per grid step
    grid = (B // TB,)

    out = pl.pallas_call(
        _scse_kernel,
        out_shape=jax.ShapeDtypeStruct((B, C, HW), jnp.float32),
        grid=grid,
        in_specs=[
            pl.BlockSpec((TB, C, HW), lambda b: (b, 0, 0)),   # x block
            pl.BlockSpec((C, Cr), lambda b: (0, 0)),          # w1 (fc1.weight.T)
            pl.BlockSpec((1, Cr), lambda b: (0, 0)),          # b1
            pl.BlockSpec((C, Cr), lambda b: (0, 0)),          # w2 (fc2.weight)
            pl.BlockSpec((C, 1), lambda b: (0, 0)),           # b2
            pl.BlockSpec((C, 1), lambda b: (0, 0)),           # wspa (1x1 conv)
        ],
        out_specs=pl.BlockSpec((TB, C, HW), lambda b: (b, 0, 0)),
        compiler_params=pltpu.CompilerParams(
            dimension_semantics=("parallel",)),               # 2 TCs on v7x
    )(x, w1, b1, w2, b2, wspa)
    return out.reshape(B, C, H, W)


# --------------------------------------------------------------------------
# Pure-JAX reference (mirrors the PyTorch SCSEBlock forward)
# --------------------------------------------------------------------------
def scse_reference(x, w1, b1, w2, b2, wspa):
    pooled = jnp.mean(x, axis=(2, 3))                               # (B, C)
    h = jnp.maximum(pooled @ w1 + b1, 0.0)                          # (B, Cr)
    chn = jax.nn.sigmoid(h @ w2.T + b2[:, 0])                       # (B, C)
    spa = jax.nn.sigmoid(jnp.einsum("bchw,c->bhw", x, wspa[:, 0]))  # (B, H, W)
    return x * chn[:, :, None, None] + x * spa[:, None, :, :]


# --------------------------------------------------------------------------
if __name__ == "__main__":
    # SCSEBlock(channel=32, reduction=16)  -> C//r = 2
    B, C, H, W = 2, 32, 16, 16
    reduction = 16
    Cr = C // reduction

    key = jax.random.PRNGKey(0)
    kx, k1, k2, k3, k4, k5 = jax.random.split(key, 6)
    x = jax.random.normal(kx, (B, C, H, W), jnp.float32)
    # fc1: Linear(C, Cr)  -> stored transposed (C, Cr) for broadcast form
    w1 = 0.1 * jax.random.normal(k1, (C, Cr), jnp.float32)
    b1 = 0.1 * jax.random.normal(k2, (1, Cr), jnp.float32)
    # fc2: Linear(Cr, C)  -> stored as PyTorch weight (C, Cr)
    w2 = 0.1 * jax.random.normal(k3, (C, Cr), jnp.float32)
    b2 = 0.1 * jax.random.normal(k4, (C, 1), jnp.float32)
    # spatial_se: Conv2d(C, 1, 1x1, bias=False)  -> (C, 1)
    wspa = 0.1 * jax.random.normal(k5, (C, 1), jnp.float32)

    fwd = jax.jit(scse_block)
    out = jax.block_until_ready(fwd(x, w1, b1, w2, b2, wspa))

    ref = scse_reference(x, w1, b1, w2, b2, wspa)
    assert out.shape == (B, C, H, W), out.shape
    max_err = float(jnp.max(jnp.abs(out - ref)))
    assert jnp.allclose(out, ref, rtol=1e-4, atol=1e-4), max_err

    print("KERNEL_OK")
</pallas_src>

<mosaic_0001>
module attributes {stable_mosaic.version = 11 : i64} {
  func.func @_scse_kernel(%arg0: i32, %arg1: memref<2x32x256xf32, #tpu.memory_space<vmem>>, %arg2: memref<32x2xf32, #tpu.memory_space<vmem>>, %arg3: memref<1x2xf32, #tpu.memory_space<vmem>>, %arg4: memref<32x2xf32, #tpu.memory_space<vmem>>, %arg5: memref<32x1xf32, #tpu.memory_space<vmem>>, %arg6: memref<32x1xf32, #tpu.memory_space<vmem>>, %arg7: memref<2x32x256xf32, #tpu.memory_space<vmem>>) attributes {dimension_semantics = [#tpu.dimension_semantics<parallel>], iteration_bounds = array<i64: 1>, scalar_prefetch = 0 : i64, scratch_operands = 0 : i64, tpu.core_type = #tpu.core_type<tc>, window_params = [{transform_indices = @transform_0, window_bounds = array<i64: 2, 32, 256>}, {pipeline_mode = #tpu.pipeline_mode<synchronous>, transform_indices = @transform_1, window_bounds = array<i64: 32, 2>}, {pipeline_mode = #tpu.pipeline_mode<synchronous>, transform_indices = @transform_2, window_bounds = array<i64: 1, 2>}, {pipeline_mode = #tpu.pipeline_mode<synchronous>, transform_indices = @transform_3, window_bounds = array<i64: 32, 2>}, {pipeline_mode = #tpu.pipeline_mode<synchronous>, transform_indices = @transform_4, window_bounds = array<i64: 32, 1>}, {pipeline_mode = #tpu.pipeline_mode<synchronous>, transform_indices = @transform_5, window_bounds = array<i64: 32, 1>}, {transform_indices = @transform_6, window_bounds = array<i64: 2, 32, 256>}]} {
    %c0 = arith.constant 0 : index
    %c0_0 = arith.constant 0 : index
    %c0_1 = arith.constant 0 : index
    %0 = vector.load %arg1[%c0, %c0_0, %c0_1] : memref<2x32x256xf32, #tpu.memory_space<vmem>>, vector<2x32x256xf32>
    %cst = arith.constant dense<0.000000e+00> : vector<2x32xf32>
    %1 = vector.multi_reduction <add>, %0, %cst [2] : vector<2x32x256xf32> to vector<2x32xf32>
    %2 = vector.shape_cast %1 : vector<2x32xf32> to vector<2x32x1xf32>
    %cst_2 = arith.constant 3.906250e-03 : f32
    %3 = vector.broadcast %cst_2 : f32 to vector<2x32x1xf32>
    %4 = arith.mulf %2, %3 : vector<2x32x1xf32>
    %c0_3 = arith.constant 0 : index
    %c0_4 = arith.constant 0 : index
    %5 = vector.load %arg2[%c0_3, %c0_4] : memref<32x2xf32, #tpu.memory_space<vmem>>, vector<32x2xf32>
    %6 = vector.shape_cast %5 : vector<32x2xf32> to vector<1x32x2xf32>
    %7 = vector.broadcast %4 : vector<2x32x1xf32> to vector<2x32x2xf32>
    %8 = vector.broadcast %6 : vector<1x32x2xf32> to vector<2x32x2xf32>
    %9 = arith.mulf %7, %8 : vector<2x32x2xf32>
    %cst_5 = arith.constant dense<0.000000e+00> : vector<2x2xf32>
    %10 = vector.multi_reduction <add>, %9, %cst_5 [1] : vector<2x32x2xf32> to vector<2x2xf32>
    %11 = vector.shape_cast %10 : vector<2x2xf32> to vector<2x1x2xf32>
    %c0_6 = arith.constant 0 : index
    %c0_7 = arith.constant 0 : index
    %12 = vector.load %arg3[%c0_6, %c0_7] : memref<1x2xf32, #tpu.memory_space<vmem>>, vector<1x2xf32>
    %13 = vector.shape_cast %12 : vector<1x2xf32> to vector<1x1x2xf32>
    %14 = vector.broadcast %13 : vector<1x1x2xf32> to vector<2x1x2xf32>
    %15 = arith.addf %11, %14 : vector<2x1x2xf32>
    %cst_8 = arith.constant 0.000000e+00 : f32
    %16 = vector.broadcast %cst_8 : f32 to vector<2x1x2xf32>
    %17 = arith.maximumf %15, %16 : vector<2x1x2xf32>
    %c0_9 = arith.constant 0 : index
    %c0_10 = arith.constant 0 : index
    %18 = vector.load %arg4[%c0_9, %c0_10] : memref<32x2xf32, #tpu.memory_space<vmem>>, vector<32x2xf32>
    %19 = vector.shape_cast %18 : vector<32x2xf32> to vector<1x32x2xf32>
    %20 = vector.broadcast %17 : vector<2x1x2xf32> to vector<2x32x2xf32>
    %21 = vector.broadcast %19 : vector<1x32x2xf32> to vector<2x32x2xf32>
    %22 = arith.mulf %20, %21 : vector<2x32x2xf32>
    %cst_11 = arith.constant dense<0.000000e+00> : vector<2x32xf32>
    %23 = vector.multi_reduction <add>, %22, %cst_11 [2] : vector<2x32x2xf32> to vector<2x32xf32>
    %24 = vector.shape_cast %23 : vector<2x32xf32> to vector<2x32x1xf32>
    %c0_12 = arith.constant 0 : index
    %c0_13 = arith.constant 0 : index
    %25 = vector.load %arg5[%c0_12, %c0_13] : memref<32x1xf32, #tpu.memory_space<vmem>>, vector<32x1xf32>
    %26 = vector.shape_cast %25 : vector<32x1xf32> to vector<1x32x1xf32>
    %27 = vector.broadcast %26 : vector<1x32x1xf32> to vector<2x32x1xf32>
    %28 = arith.addf %24, %27 : vector<2x32x1xf32>
    %29 = arith.negf %28 : vector<2x32x1xf32>
    %30 = math.exp %29 : vector<2x32x1xf32>
    %cst_14 = arith.constant 1.000000e+00 : f32
    %31 = vector.broadcast %cst_14 : f32 to vector<2x32x1xf32>
    %32 = arith.addf %31, %30 : vector<2x32x1xf32>
    %33 = arith.divf %31, %32 : vector<2x32x1xf32>
    %c0_15 = arith.constant 0 : index
    %c0_16 = arith.constant 0 : index
    %34 = vector.load %arg6[%c0_15, %c0_16] : memref<32x1xf32, #tpu.memory_space<vmem>>, vector<32x1xf32>
    %35 = vector.shape_cast %34 : vector<32x1xf32> to vector<1x32x1xf32>
    %36 = vector.broadcast %35 : vector<1x32x1xf32> to vector<2x32x256xf32>
    %37 = arith.mulf %0, %36 : vector<2x32x256xf32>
    %cst_17 = arith.constant dense<0.000000e+00> : vector<2x256xf32>
    %38 = vector.multi_reduction <add>, %37, %cst_17 [1] : vector<2x32x256xf32> to vector<2x256xf32>
    %39 = vector.shape_cast %38 : vector<2x256xf32> to vector<2x1x256xf32>
    %40 = arith.negf %39 : vector<2x1x256xf32>
    %41 = math.exp %40 : vector<2x1x256xf32>
    %cst_18 = arith.constant 1.000000e+00 : f32
    %42 = vector.broadcast %cst_18 : f32 to vector<2x1x256xf32>
    %43 = arith.addf %42, %41 : vector<2x1x256xf32>
    %44 = arith.divf %42, %43 : vector<2x1x256xf32>
    %45 = vector.broadcast %33 : vector<2x32x1xf32> to vector<2x32x256xf32>
    %46 = vector.broadcast %44 : vector<2x1x256xf32> to vector<2x32x256xf32>
    %47 = arith.addf %45, %46 : vector<2x32x256xf32>
    %48 = arith.mulf %0, %47 : vector<2x32x256xf32>
    %c0_19 = arith.constant 0 : index
    %c0_20 = arith.constant 0 : index
    %c0_21 = arith.constant 0 : index
    %49 = vector.load %arg7[%c0_19, %c0_20, %c0_21] : memref<2x32x256xf32, #tpu.memory_space<vmem>>, vector<2x32x256xf32>
    tpu.vector_store %arg7[%c0_19, %c0_20, %c0_21], %48 {strides = array<i32>} : memref<2x32x256xf32, #tpu.memory_space<vmem>>, vector<2x32x256xf32>,
    return
  }
  func.func @transform_0(%arg0: i32) -> (i32, i32, i32) {
    %c0_i32 = arith.constant 0 : i32
    %c0_i32_0 = arith.constant 0 : i32
    %c0_i32_1 = arith.constant 0 : i32
    return %arg0, %c0_i32, %c0_i32_0 : i32, i32, i32
  }
  func.func @transform_1(%arg0: i32) -> (i32, i32) {
    %c0_i32 = arith.constant 0 : i32
    %c0_i32_0 = arith.constant 0 : i32
    %c0_i32_1 = arith.constant 0 : i32
    return %c0_i32, %c0_i32_0 : i32, i32
  }
  func.func @transform_2(%arg0: i32) -> (i32, i32) {
    %c0_i32 = arith.constant 0 : i32
    %c0_i32_0 = arith.constant 0 : i32
    %c0_i32_1 = arith.constant 0 : i32
    return %c0_i32, %c0_i32_0 : i32, i32
  }
  func.func @transform_3(%arg0: i32) -> (i32, i32) {
    %c0_i32 = arith.constant 0 : i32
    %c0_i32_0 = arith.constant 0 : i32
    %c0_i32_1 = arith.constant 0 : i32
    return %c0_i32, %c0_i32_0 : i32, i32
  }
  func.func @transform_4(%arg0: i32) -> (i32, i32) {
    %c0_i32 = arith.constant 0 : i32
    %c0_i32_0 = arith.constant 0 : i32
    %c0_i32_1 = arith.constant 0 : i32
    return %c0_i32, %c0_i32_0 : i32, i32
  }
  func.func @transform_5(%arg0: i32) -> (i32, i32) {
    %c0_i32 = arith.constant 0 : i32
    %c0_i32_0 = arith.constant 0 : i32
    %c0_i32_1 = arith.constant 0 : i32
    return %c0_i32, %c0_i32_0 : i32, i32
  }
  func.func @transform_6(%arg0: i32) -> (i32, i32, i32) {
    %c0_i32 = arith.constant 0 : i32
    %c0_i32_0 = arith.constant 0 : i32
    %c0_i32_1 = arith.constant 0 : i32
    return %arg0, %c0_i32, %c0_i32_0 : i32, i32, i32
  }
}

</mosaic_0001>

<bundles_post_ra>
// kernel: scse_block.1
= control target key start
LH: loop header
LB: loop body
LE: loop exit
PB: predicated region body
PF: predicated region fallthrough
CT: control target
= control target key end

     0   :  { %v474_v24 = vmov 0   ;;  %vm83_vm0 = vcmask 15360   ;;  %s753_s0 = inlined_call_operand.vmem [shape: f32[2,32,256], index: 0, kind: input, shape index: {}]   ;;  %s754_s1 = inlined_call_operand.vmem [shape: f32[32,2], index: 1, kind: input, shape index: {}]   ;;  %s755_s2 = inlined_call_operand.vmem [shape: f32[1,2], index: 2, kind: input, shape index: {}]   ;;  %s756_s3 = inlined_call_operand.vmem [shape: f32[32,2], index: 3, kind: input, shape index: {}]   ;;  %s757_s5 = inlined_call_operand.vmem [shape: f32[32,1], index: 5, kind: input, shape index: {}]   ;;  %s758_s4 = inlined_call_operand.vmem [shape: f32[32,1], index: 4, kind: input, shape index: {}]   ;;  %s759_s6 = inlined_call_operand.vmem [shape: f32[2,32,256], index: 6, kind: output, shape index: {}]  }
   0x1   :  { %v513_v0 = vld [vmem:[%s753_s0] sm:$0xff]  ;;  %v518_v1 = vld [vmem:[%s753_s0 + $0x8] sm:$0xff]  ;;  %v535_v5 = vld [vmem:[%s753_s0 + $0x10] sm:$0xff]  ;;  %425 = vset.pattern.permute.xlu1 %v474_v24  ;;  %424 = vset.pattern.permute.xlu0 %v474_v24  ;;  %v119_v24 = vlaneseq }
   0x2   :  { %v523_v2 = vld [vmem:[%s753_s0 + $0x40] sm:$0xff]  ;;  %v39_v3 = vadd.f32 %v518_v1, %v513_v0  ;;  %v530_v4 = vld [vmem:[%s753_s0 + $0x48] sm:$0xff]  ;;  %v540_v6 = vld [vmem:[%s753_s0 + $0x18] sm:$0xff] }
   0x3   :  { %v51_v7 = vadd.f32 %v530_v4, %v523_v2  ;;  %v547_v8 = vld [vmem:[%s753_s0 + $0x50] sm:$0xff]  ;;  %v552_v9 = vld [vmem:[%s753_s0 + $0x58] sm:$0xff]  ;;  %v42_v10 = vadd.f32 %v540_v6, %v535_v5  ;;  %v561_v12 = vld [vmem:[%s753_s0 + $0x20] sm:$0xff] }
   0x4   :  { %40 = vadd.xlane.f32.xlu0 %v39_v3  ;;  %v54_v11 = vadd.f32 %v552_v9, %v547_v8  ;;  %v566_v13 = vld [vmem:[%s753_s0 + $0x28] sm:$0xff]  ;;  %v571_v14 = vld [vmem:[%s753_s0 + $0x60] sm:$0xff]  ;;  %v585_v18 = vld [vmem:[%s753_s0 + $0x30] sm:$0xff] }
   0x5   :  { %52 = vadd.xlane.f32.xlu1 %v51_v7  ;;  %v576_v15 = vld [vmem:[%s753_s0 + $0x68] sm:$0xff]  ;;  %v45_v16 = vadd.f32 %v566_v13, %v561_v12  ;;  %v590_v19 = vld [vmem:[%s753_s0 + $0x38] sm:$0xff]  ;;  %v595_v20 = vld [vmem:[%s753_s0 + $0x70] sm:$0xff] }
   0x6   :  { %v57_v17 = vadd.f32 %v576_v15, %v571_v14  ;;  %v600_v21 = vld [vmem:[%s753_s0 + $0x78] sm:$0xff]  ;;  %v48_v22 = vadd.f32 %v590_v19, %v585_v18  ;;  %v71_v28 = vld [vmem:[%s754_s1] sm:$0xff]  ;;  %v72_v30 = vld [vmem:[%s754_s1 + $0x8] sm:$0xff] }
   0x7   :  { %v60_v23 = vadd.f32 %v600_v21, %v595_v20  ;;  %v73_v39 = vld [vmem:[%s754_s1 + $0x10] sm:$0xff]  ;;  %v74_v50 = vld [vmem:[%s754_s1 + $0x18] sm:$0xff] }
   0x8   :  { %43 = vadd.xlane.f32.xlu0 %v42_v10 }
   0x9   :  { %55 = vadd.xlane.f32.xlu1 %v54_v11 }
   0xc   :  { %46 = vadd.xlane.f32.xlu0 %v45_v16 }
   0xd   :  { %58 = vadd.xlane.f32.xlu1 %v57_v17 }
  0x10   :  { %49 = vadd.xlane.f32.xlu0 %v48_v22 }
  0x11   :  { %61 = vadd.xlane.f32.xlu1 %v60_v23 }
  0x91   :  { %v41_v25 = vpop.xlane.xlu0 %40 }
  0x92   :  { %v53_v26 = vpop.xlane.xlu1 %52  ;;  %v63_v32 = vmul.f32 0.00390625, %v41_v25 }
  0x93   :  { %v67_v27 = vmul.f32 0.00390625, %v53_v26 }
  0x94   :  { %v75_v41 = vmul.f32 %v71_v28, %v63_v32 }
  0x95   :  { %v79_v29 = vmul.f32 %v71_v28, %v67_v27  ;;  %v44_v31 = vpop.xlane.xlu0 %43 }
  0x96   :  { %v64_v33 = vmul.f32 0.00390625, %v44_v31  ;;  %v56_v34 = vpop.xlane.xlu1 %55  ;;  %v84_v52 = vsel %vm83_vm0, %v75_v41, 0.0  ;;  %v110_v31 = vld [vmem:[%s755_s2] sm:$0x1] }
  0x97   :  { %v68_v35 = vmul.f32 0.00390625, %v56_v34  ;;  %v97_v37 = vsel %vm83_vm0, %v79_v29, 0.0  ;;  %v120_v29 = vshrl.u32 %v119_v24, 7 }
  0x98   :  { %v76_v36 = vmul.f32 %v72_v30, %v64_v33 }
  0x99   :  { %v80_v38 = vmul.f32 %v72_v30, %v68_v35  ;;  %v47_v40 = vpop.xlane.xlu0 %46  ;;  %v121_v35 = vsub.s32 0, %v120_v29 }
  0x9a   :  { %v65_v42 = vmul.f32 0.00390625, %v47_v40  ;;  %v59_v43 = vpop.xlane.xlu1 %58  ;;  %v85_v46 = vsel %vm83_vm0, %v76_v36, 0.0 }
  0x9b   :  { %v98_v44 = vsel %vm83_vm0, %v80_v38, 0.0  ;;  %v69_v45 = vmul.f32 0.00390625, %v59_v43  ;;  %v86_v56 = vadd.f32 %v85_v46, %v84_v52  ;;  %v116_v38 = vld [vmem:[%s756_s3 + $0x8] sm:$0xff]  ;;  %v117_v43 = vld [vmem:[%s756_s3 + $0x10] sm:$0xff] }
  0x9c   :  { %v99_v47 = vadd.f32 %v98_v44, %v97_v37  ;;  %v77_v48 = vmul.f32 %v73_v39, %v65_v42  ;;  %v118_v42 = vld [vmem:[%s756_s3 + $0x18] sm:$0xff] }
  0x9d   :  { %v81_v49 = vmul.f32 %v73_v39, %v69_v45  ;;  %v50_v51 = vpop.xlane.xlu0 %49  ;;  %v115_v39 = vld [vmem:[%s756_s3] sm:$0xff] }
  0x9e   :  { %v87_v53 = vsel %vm83_vm0, %v77_v48, 0.0  ;;  %v66_v54 = vmul.f32 0.00390625, %v50_v51  ;;  %v62_v55 = vpop.xlane.xlu1 %61 }
  0x9f   :  { %v100_v57 = vsel %vm83_vm0, %v81_v49, 0.0  ;;  %v70_v58 = vmul.f32 0.00390625, %v62_v55  ;;  %v88_v61 = vadd.f32 %v87_v53, %v86_v56 }
  0xa0   :  { %v101_v59 = vadd.f32 %v100_v57, %v99_v47  ;;  %v78_v60 = vmul.f32 %v74_v50, %v66_v54 }
  0xa1   :  { %v82_v62 = vmul.f32 %v74_v50, %v70_v58 }
  0xa2   :  { %v89_v63 = vsel %vm83_vm0, %v78_v60, 0.0 }
  0xa3   :  { %v90_v3 = vadd.f32 %v89_v63, %v88_v61  ;;  %v102_v7 = vsel %vm83_vm0, %v82_v62, 0.0  ;;  %v220_v61 = vld [vmem:[%s757_s5 + $0x8] sm:$0xff]  ;;  %v221_v62 = vld [vmem:[%s757_s5 + $0x10] sm:$0xff]  ;;  %v219_v63 = vld [vmem:[%s757_s5] sm:$0xff] }
  0xa4   :  { %v103_v10 = vadd.f32 %v102_v7, %v101_v59  ;;  %v160_v7 = vld [vmem:[%s758_s4 + $0x8] sm:$0xff] }
  0xa5   :  { %v91_v11 = vrot.slane %v90_v3, 4 }
  0xa6   :  { %v104_v16 = vrot.slane %v103_v10, 4 }
  0xa7   :  { %v92_v17 = vadd.f32 %v91_v11, %v90_v3  ;;  %v222_v3 = vld [vmem:[%s757_s5 + $0x18] sm:$0xff] }
  0xa8   :  { %v105_v22 = vadd.f32 %v104_v16, %v103_v10  ;;  %v159_v10 = vld [vmem:[%s758_s4] sm:$0xff] }
  0xa9   :  { %v93_v23 = vrot.slane %v92_v17, 2 }
  0xaa   :  { %v106_v25 = vrot.slane %v105_v22, 2 }
  0xab   :  { %v94_v26 = vadd.f32 %v93_v23, %v92_v17  ;;  %v161_v23 = vld [vmem:[%s758_s4 + $0x10] sm:$0xff] }
  0xac   :  { %v107_v27 = vadd.f32 %v106_v25, %v105_v22 }
  0xad   :  { %v95_v28 = vrot.slane %v94_v26, 1 }
  0xae   :  { %v108_v30 = vrot.slane %v107_v27, 1 }
  0xaf   :  { %v96_v32 = vadd.f32 %v95_v28, %v94_v26  ;;  %v162_v26 = vld [vmem:[%s758_s4 + $0x18] sm:$0xff] }
  0xb0   :  { %v109_v33 = vadd.f32 %v108_v30, %v107_v27 }
  0xb1   :  { %v111_v34 = vadd.f32 %v110_v31, %v96_v32 }
  0xb2   :  { %v112_v36 = vadd.f32 %v110_v31, %v109_v33 }
  0xb3   :  { %v113_v37 = vmax.f32 %v111_v34, 0.0 }
  0xb4   :  { %v114_v40 = vmax.f32 %v112_v36, 0.0 }
  0xb5   :  { %v122_v41 = vrot.slane %v113_v37, %v121_v35 }
  0xb6   :  { %v126_v46 = vrot.slane %v114_v40, %v121_v35 }
  0xb7   :  { %v128_v44 = vmul.f32 %v122_v41, %v116_v38  ;;  %v127_v45 = vmul.f32 %v122_v41, %v115_v39  ;;  %v130_v49 = vmul.f32 %v122_v41, %v118_v42  ;;  %v129_v50 = vmul.f32 %v122_v41, %v117_v43 }
  0xb8   :  { %v132_v53 = vmul.f32 %v126_v46, %v116_v38  ;;  %v131_v54 = vmul.f32 %v126_v46, %v115_v39  ;;  %v134_v57 = vmul.f32 %v126_v46, %v118_v42  ;;  %v133_v58 = vmul.f32 %v126_v46, %v117_v43 }
  0xb9   :  { %v138_v47 = vsel %vm83_vm0, %v128_v44, 0.0  ;;  %v135_v48 = vsel %vm83_vm0, %v127_v45, 0.0  ;;  %v144_v51 = vsel %vm83_vm0, %v130_v49, 0.0  ;;  %v141_v52 = vsel %vm83_vm0, %v129_v50, 0.0 }
  0xba   :  { %139 = vadd.xlane.f32.xlu1 %v138_v47  ;;  %136 = vadd.xlane.f32.xlu0 %v135_v48  ;;  %v150_v55 = vsel %vm83_vm0, %v132_v53, 0.0  ;;  %v147_v56 = vsel %vm83_vm0, %v131_v54, 0.0  ;;  %v156_v59 = vsel %vm83_vm0, %v134_v57, 0.0  ;;  %v153_v60 = vsel %vm83_vm0, %v133_v58, 0.0 }
  0xbe   :  { %145 = vadd.xlane.f32.xlu1 %v144_v51  ;;  %142 = vadd.xlane.f32.xlu0 %v141_v52 }
  0xc2   :  { %151 = vadd.xlane.f32.xlu1 %v150_v55  ;;  %148 = vadd.xlane.f32.xlu0 %v147_v56 }
  0xc6   :  { %157 = vadd.xlane.f32.xlu1 %v156_v59  ;;  %154 = vadd.xlane.f32.xlu0 %v153_v60 }
  0xd7   :  { %230 = vperm.xlu1 %425, %v220_v61  }
  0xdb   :  { %235 = vperm.xlu1 %425, %v221_v62  }
  0xdc   :  { %225 = vperm.xlu0 %424, %v219_v63  }
  0xdf   :  { %240 = vperm.xlu1 %425, %v222_v3  }
 0x147   :  { %v140_v11 = vpop.xlane.xlu1 %139  ;;  %v137_v16 = vpop.xlane.xlu0 %136 }
 0x148   :  { %v164_v17 = vadd.f32 %v160_v7, %v140_v11  ;;  %v163_v22 = vadd.f32 %v159_v10, %v137_v16 }
 0x14a   :  { %v412_v24 = vmul.f32 -1.442695, %v164_v17  ;;  %v411_v25 = vmul.f32 -1.442695, %v163_v22 }
 0x14b   :  { %v146_v27 = vpop.xlane.xlu1 %145  ;;  %v143_v28 = vpop.xlane.xlu0 %142 }
 0x14c   :  { %426 = vpow2.f32 %v412_v24  ;;  %v165_v29 = vadd.f32 %v161_v23, %v143_v28  ;;  %v166_v30 = vadd.f32 %v162_v26, %v146_v27 }
 0x14d   :  { %428 = vpow2.f32 %v411_v25 }
 0x14e   :  { %v413_v31 = vmul.f32 -1.442695, %v165_v29  ;;  %v414_v35 = vmul.f32 -1.442695, %v166_v30 }
 0x14f   :  { %v152_v32 = vpop.xlane.xlu1 %151  ;;  %v149_v33 = vpop.xlane.xlu0 %148 }
 0x150   :  { %v168_v34 = vadd.f32 %v160_v7, %v152_v32  ;;  %430 = vpow2.f32 %v413_v31  ;;  %v167_v36 = vadd.f32 %v159_v10, %v149_v33 }
 0x152   :  { %v416_v37 = vmul.f32 -1.442695, %v168_v34  ;;  %v415_v41 = vmul.f32 -1.442695, %v167_v36 }
 0x153   :  { %v158_v38 = vpop.xlane.xlu1 %157  ;;  %v155_v39 = vpop.xlane.xlu0 %154 }
 0x154   :  { %432 = vpow2.f32 %v416_v37  ;;  %v170_v40 = vadd.f32 %v162_v26, %v158_v38  ;;  %v169_v42 = vadd.f32 %v161_v23, %v155_v39 }
 0x155   :  { %434 = vpow2.f32 %v414_v35 }
 0x156   :  { %v427_v43 = vpop.eup %426  ;;  %v418_v44 = vmul.f32 -1.442695, %v170_v40  ;;  %v417_v47 = vmul.f32 -1.442695, %v169_v42 }
 0x157   :  { %v429_v45 = vpop.eup %428  ;;  %v196_v48 = vadd.f32 1.0, %v427_v43  ;;  %v231_v17 = vpop.permute.xlu1 %230 }
 0x158   :  { %v195_v46 = vadd.f32 1.0, %v429_v45  ;;  %436 = vpow2.f32 %v418_v44  ;;  %v245_v24 = vmul.f32 %v231_v17, %v535_v5  ;;  %v246_v26 = vmul.f32 %v231_v17, %v540_v6 }
 0x159   :  { %438 = vpow2.f32 %v415_v41  ;;  %v253_v35 = vmul.f32 %v231_v17, %v547_v8  ;;  %v254_v39 = vmul.f32 %v231_v17, %v552_v9 }
 0x15a   :  { %440 = vrcp.f32 %v195_v46  ;;  %v431_v49 = vpop.eup %430 }
 0x15b   :  { %442 = vpow2.f32 %v417_v47  ;;  %v197_v51 = vadd.f32 1.0, %v431_v49  ;;  %v226_v22 = vpop.permute.xlu0 %225  ;;  %v236_v23 = vpop.permute.xlu1 %235 }
 0x15c   :  { %444 = vrcp.f32 %v196_v48  ;;  %v243_v25 = vmul.f32 %v226_v22, %v513_v0  ;;  %v244_v27 = vmul.f32 %v226_v22, %v518_v1  ;;  %v247_v28 = vmul.f32 %v236_v23, %v561_v12 }
 0x15d   :  { %v248_v30 = vmul.f32 %v236_v23, %v566_v13  ;;  %v251_v36 = vmul.f32 %v226_v22, %v523_v2  ;;  %v252_v40 = vmul.f32 %v226_v22, %v530_v4  ;;  %v255_v42 = vmul.f32 %v236_v23, %v571_v14 }
 0x15e   :  { %v433_v50 = vpop.eup %432  ;;  %v259_v29 = vadd.f32 %v245_v24, %v243_v25  ;;  %v268_v31 = vadd.f32 %v246_v26, %v244_v27  ;;  %v256_v45 = vmul.f32 %v236_v23, %v576_v15 }
 0x15f   :  { %v435_v52 = vpop.eup %434  ;;  %v200_v53 = vadd.f32 1.0, %v433_v50  ;;  %v241_v32 = vpop.permute.xlu1 %240  ;;  %v277_v43 = vadd.f32 %v253_v35, %v251_v36  ;;  %v286_v46 = vadd.f32 %v254_v39, %v252_v40 }
 0x160   :  { %v198_v55 = vadd.f32 1.0, %v435_v52  ;;  %v249_v33 = vmul.f32 %v241_v32, %v585_v18  ;;  %v260_v34 = vadd.f32 %v259_v29, %v247_v28  ;;  %v250_v37 = vmul.f32 %v241_v32, %v590_v19 }
 0x161   :  { %446 = vrcp.f32 %v200_v53  ;;  %v269_v38 = vadd.f32 %v268_v31, %v248_v30  ;;  %v257_v48 = vmul.f32 %v241_v32, %v595_v20  ;;  %v278_v50 = vadd.f32 %v277_v43, %v255_v42 }
 0x162   :  { %v437_v54 = vpop.eup %436  ;;  %448 = vrcp.f32 %v197_v51  ;;  %v261_v41 = vadd.f32 %v260_v34, %v249_v33  ;;  %v258_v51 = vmul.f32 %v241_v32, %v600_v21  ;;  %v287_v52 = vadd.f32 %v286_v46, %v256_v45 }
 0x163   :  { %v439_v56 = vpop.eup %438  ;;  %v202_v57 = vadd.f32 1.0, %v437_v54  ;;  %v270_v44 = vadd.f32 %v269_v38, %v250_v37 }
 0x164   :  { %v441_v58 = vpop.eup %440  ;;  %v199_v59 = vadd.f32 1.0, %v439_v56  ;;  %v262_v47 = vrot.slane %v261_v41, 4  ;;  %v288_v56 = vadd.f32 %v287_v52, %v258_v51 }
 0x165   :  { %450 = vrcp.f32 %v202_v57  ;;  %321 = vperm.xlu1 %425, %v441_v58   ;;  %v443_v60 = vpop.eup %442  ;;  %v271_v49 = vrot.slane %v270_v44, 4 }
 0x166   :  { %452 = vrcp.f32 %v198_v55  ;;  %v445_v61 = vpop.eup %444  ;;  %v201_v62 = vadd.f32 1.0, %v443_v60  ;;  %v263_v53 = vadd.f32 %v262_v47, %v261_v41  ;;  %v279_v55 = vadd.f32 %v278_v50, %v257_v48 }
 0x167   :  { %454 = vrcp.f32 %v199_v59  ;;  %v272_v54 = vadd.f32 %v271_v49, %v270_v44  ;;  %v289_v60 = vrot.slane %v288_v56, 4 }
 0x168   :  { %456 = vrcp.f32 %v201_v62  ;;  %v264_v57 = vrot.slane %v263_v53, 2  ;;  %v280_v59 = vrot.slane %v279_v55, 4 }
 0x169   :  { %326 = vperm.xlu1 %425, %v445_v61   ;;  %v273_v58 = vrot.slane %v272_v54, 2 }
 0x16a   :  { %v265_v61 = vadd.f32 %v264_v57, %v263_v53 }
 0x16b   :  { %v447_v63 = vpop.eup %446  ;;  %v274_v62 = vadd.f32 %v273_v58, %v272_v54 }
 0x16c   :  { %v449_v3 = vpop.eup %448  ;;  %346 = vperm.xlu0 %424, %v447_v63   ;;  %v281_v63 = vadd.f32 %v280_v59, %v279_v55 }
 0x16d   :  { %331 = vperm.xlu1 %425, %v449_v3   ;;  %v290_v3 = vadd.f32 %v289_v60, %v288_v56 }
 0x16f   :  { %v451_v7 = vpop.eup %450 }
 0x170   :  { %v453_v10 = vpop.eup %452  ;;  %356 = vperm.xlu0 %424, %v451_v7   ;;  %v266_v7 = vrot.slane %v265_v61, 1 }
 0x171   :  { %336 = vperm.xlu1 %425, %v453_v10   ;;  %v455_v11 = vpop.eup %454  ;;  %v275_v10 = vrot.slane %v274_v62, 1 }
 0x172   :  { %v457_v16 = vpop.eup %456  ;;  %v267_v17 = vadd.f32 %v266_v7, %v265_v61 }
 0x173   :  { %v276_v22 = vadd.f32 %v275_v10, %v274_v62 }
 0x174   :  { %v419_v25 = vmul.f32 -1.442695, %v267_v17 }
 0x175   :  { %341 = vperm.xlu1 %425, %v455_v11   ;;  %v282_v11 = vrot.slane %v281_v63, 2  ;;  %v420_v27 = vmul.f32 -1.442695, %v276_v22 }
 0x176   :  { %458 = vpow2.f32 %v419_v25 }
 0x177   :  { %v283_v23 = vadd.f32 %v282_v11, %v281_v63  ;;  %460 = vpow2.f32 %v420_v27 }
 0x179   :  { %351 = vperm.xlu1 %425, %v457_v16   ;;  %v291_v16 = vrot.slane %v290_v3, 2  ;;  %v284_v26 = vrot.slane %v283_v23, 1 }
 0x17b   :  { %v292_v24 = vadd.f32 %v291_v16, %v290_v3  ;;  %v285_v29 = vadd.f32 %v284_v26, %v283_v23 }
 0x17d   :  { %v293_v28 = vrot.slane %v292_v24, 1  ;;  %v421_v31 = vmul.f32 -1.442695, %v285_v29 }
 0x17f   :  { %v294_v30 = vadd.f32 %v293_v28, %v292_v24  ;;  %462 = vpow2.f32 %v421_v31 }
 0x180   :  { %v459_v33 = vpop.eup %458 }
 0x181   :  { %v422_v32 = vmul.f32 -1.442695, %v294_v30  ;;  %v461_v34 = vpop.eup %460  ;;  %v307_v35 = vadd.f32 1.0, %v459_v33 }
 0x182   :  { %v308_v36 = vadd.f32 1.0, %v461_v34 }
 0x183   :  { %464 = vpow2.f32 %v422_v32 }
 0x184   :  { %466 = vrcp.f32 %v307_v35 }
 0x185   :  { %468 = vrcp.f32 %v308_v36 }
 0x189   :  { %v463_v37 = vpop.eup %462 }
 0x18a   :  { %v309_v39 = vadd.f32 1.0, %v463_v37 }
 0x18c   :  { %470 = vrcp.f32 %v309_v39 }
 0x18d   :  { %v465_v38 = vpop.eup %464 }
 0x18e   :  { %v310_v40 = vadd.f32 1.0, %v465_v38  ;;  %v467_v41 = vpop.eup %466 }
 0x18f   :  { %v469_v42 = vpop.eup %468 }
 0x190   :  { %472 = vrcp.f32 %v310_v40 }
 0x196   :  { %v471_v51 = vpop.eup %470 }
 0x19a   :  { %v473_v52 = vpop.eup %472 }
 0x1e4   :  { %v322_v43 = vpop.permute.xlu1 %321 }
 0x1e5   :  { %v359_v44 = vadd.f32 %v467_v41, %v322_v43  ;;  %v360_v45 = vadd.f32 %v469_v42, %v322_v43 }
 0x1e7   :  { %v375_v46 = vmul.f32 %v359_v44, %v513_v0  ;;  %v376_v47 = vmul.f32 %v360_v45, %v518_v1 }
 0x1e8   :  { %v327_v48 = vpop.permute.xlu1 %326 }
 0x1e9   :  { %391 = vst [vmem:[%s759_s6] sm:$0xff] %v375_v46  ;;  %392 = vst [vmem:[%s759_s6 + $0x8] sm:$0xff] %v376_v47  ;;  %v361_v49 = vadd.f32 %v467_v41, %v327_v48  ;;  %v362_v50 = vadd.f32 %v469_v42, %v327_v48 }
 0x1eb   :  { %v377_v53 = vmul.f32 %v361_v49, %v535_v5  ;;  %v378_v54 = vmul.f32 %v362_v50, %v540_v6  ;;  %v347_v0 = vpop.permute.xlu0 %346 }
 0x1ec   :  { %v332_v55 = vpop.permute.xlu1 %331  ;;  %v369_v1 = vadd.f32 %v471_v51, %v347_v0  ;;  %v370_v56 = vadd.f32 %v473_v52, %v347_v0 }
 0x1ed   :  { %393 = vst [vmem:[%s759_s6 + $0x10] sm:$0xff] %v377_v53  ;;  %394 = vst [vmem:[%s759_s6 + $0x18] sm:$0xff] %v378_v54  ;;  %v363_v57 = vadd.f32 %v467_v41, %v332_v55  ;;  %v364_v58 = vadd.f32 %v469_v42, %v332_v55 }
 0x1ee   :  { %v385_v59 = vmul.f32 %v369_v1, %v547_v8  ;;  %v386_v5 = vmul.f32 %v370_v56, %v552_v9 }
 0x1ef   :  { %v379_v6 = vmul.f32 %v363_v57, %v561_v12  ;;  %v380_v60 = vmul.f32 %v364_v58, %v566_v13  ;;  %v357_v61 = vpop.permute.xlu0 %356 }
 0x1f0   :  { %401 = vst [vmem:[%s759_s6 + $0x50] sm:$0xff] %v385_v59  ;;  %402 = vst [vmem:[%s759_s6 + $0x58] sm:$0xff] %v386_v5  ;;  %v337_v62 = vpop.permute.xlu1 %336  ;;  %v373_v63 = vadd.f32 %v471_v51, %v357_v61  ;;  %v374_v3 = vadd.f32 %v473_v52, %v357_v61 }
 0x1f1   :  { %395 = vst [vmem:[%s759_s6 + $0x20] sm:$0xff] %v379_v6  ;;  %396 = vst [vmem:[%s759_s6 + $0x28] sm:$0xff] %v380_v60  ;;  %v365_v8 = vadd.f32 %v467_v41, %v337_v62  ;;  %v366_v9 = vadd.f32 %v469_v42, %v337_v62 }
 0x1f2   :  { %v389_v12 = vmul.f32 %v373_v63, %v595_v20  ;;  %v390_v13 = vmul.f32 %v374_v3, %v600_v21 }
 0x1f3   :  { %v381_v7 = vmul.f32 %v365_v8, %v585_v18  ;;  %v382_v10 = vmul.f32 %v366_v9, %v590_v19 }
 0x1f4   :  { %405 = vst [vmem:[%s759_s6 + $0x70] sm:$0xff] %v389_v12  ;;  %406 = vst [vmem:[%s759_s6 + $0x78] sm:$0xff] %v390_v13  ;;  %v342_v11 = vpop.permute.xlu1 %341 }
 0x1f5   :  { %397 = vst [vmem:[%s759_s6 + $0x30] sm:$0xff] %v381_v7  ;;  %398 = vst [vmem:[%s759_s6 + $0x38] sm:$0xff] %v382_v10  ;;  %v367_v18 = vadd.f32 %v471_v51, %v342_v11  ;;  %v368_v20 = vadd.f32 %v473_v52, %v342_v11 }
 0x1f7   :  { %v383_v19 = vmul.f32 %v367_v18, %v523_v2  ;;  %v384_v21 = vmul.f32 %v368_v20, %v530_v4 }
 0x1f8   :  { %v352_v16 = vpop.permute.xlu1 %351 }
 0x1f9   :  { %399 = vst [vmem:[%s759_s6 + $0x40] sm:$0xff] %v383_v19  ;;  %400 = vst [vmem:[%s759_s6 + $0x48] sm:$0xff] %v384_v21  ;;  %v371_v17 = vadd.f32 %v471_v51, %v352_v16  ;;  %v372_v22 = vadd.f32 %v473_v52, %v352_v16 }
 0x1fb   :  { %v387_v23 = vmul.f32 %v371_v17, %v571_v14  ;;  %v388_v24 = vmul.f32 %v372_v22, %v576_v15 }
 0x1fd   :  { %403 = vst [vmem:[%s759_s6 + $0x60] sm:$0xff] %v387_v23  ;;  %404 = vst [vmem:[%s759_s6 + $0x68] sm:$0xff] %v388_v24 }

</bundles_post_ra>
